<compile_context>
chip_gen: v7x
topology: tpu7x:2x2x1
jax: 0.10.0
libtpu: 0.0.40
codegen_flags: <defaults>
</compile_context>

<pallas_src>
import functools

import jax
import jax.numpy as jnp
from jax.experimental import pallas as pl
from jax.experimental.pallas import tpu as pltpu


def _round_up(x, m):
    return (x + m - 1) // m * m


def _block_diag(att):
    # att: [H, C] -> block-diagonal [H*C, H] with att[h] on block-column h.
    h, c = att.shape
    eye = jnp.eye(h, dtype=att.dtype)
    return (att[:, :, None] * eye[:, None, :]).reshape(h * c, h)


# --------------------------- projection kernel -------------------------------
def _project_kernel(x_ref, w_ref, attl_ref, attr_ref, xw_ref, al_ref, ar_ref):
    xw = jnp.dot(x_ref[...], w_ref[...], preferred_element_type=jnp.float32)   # [T, H*C]
    xw_ref[...] = xw
    # batched attention projections: two real matmuls instead of 16 tiny per-head dots
    al_ref[...] = jnp.dot(xw, attl_ref[...], preferred_element_type=jnp.float32)   # [T, H]
    ar_ref[...] = jnp.dot(xw, attr_ref[...], preferred_element_type=jnp.float32)   # [T, H]


def _project(x, w, attl_bd, attr_bd, *, row_tile):
    n_pad, f_in = x.shape
    hc = w.shape[1]
    heads = attl_bd.shape[1]
    full = lambda i: (0, 0)
    row = lambda i: (i, 0)
    return pl.pallas_call(
        _project_kernel,
        out_shape=(jax.ShapeDtypeStruct((n_pad, hc), jnp.float32),
                   jax.ShapeDtypeStruct((n_pad, heads), jnp.float32),
                   jax.ShapeDtypeStruct((n_pad, heads), jnp.float32)),
        grid=(n_pad // row_tile,),
        in_specs=[pl.BlockSpec((row_tile, f_in), row),
                  pl.BlockSpec((f_in, hc), full),
                  pl.BlockSpec((hc, heads), full),
                  pl.BlockSpec((hc, heads), full)],
        out_specs=(pl.BlockSpec((row_tile, hc), row),
                   pl.BlockSpec((row_tile, heads), row),
                   pl.BlockSpec((row_tile, heads), row)),
        compiler_params=pltpu.CompilerParams(
            dimension_semantics=("parallel",),
            vmem_limit_bytes=48 * 1024 * 1024),
    )(x, w, attl_bd, attr_bd)


# --------------------------- attention kernel --------------------------------
def _attention_kernel(xw_all_ref, xw_t_ref, al_t_ref, ar_t_ref, adj_ref, bias_ref,
                      out_ref, acc_ref, *, heads, out_ch, concat, apply_elu,
                      apply_log_softmax, negative_slope, lowp):
    cdt = jnp.bfloat16 if lowp else jnp.float32

    xw_all = xw_all_ref[...]                      # [N_pad, H*C] f32 (full-resident)
    xw_t = xw_t_ref[...]                          # [T, H*C]
    al_t = al_t_ref[...]                          # [H, N_pad]   (full-resident)
    ar_t = ar_t_ref[...]                          # [T, H]
    mask = adj_ref[...] != 0                      # [T, N_pad]   int8 mask -> bool

    xw_all_mm = xw_all.astype(cdt)                # matmul operands (bf16 on v6e/v7x)
    xw_t_mm = xw_t.astype(cdt)

    contract_last = (((1,), (1,)), ((), ()))
    neg_big = jnp.float32(-1e30)

    acc = None
    for h in range(heads):
        lo, hi = h * out_ch, (h + 1) * out_ch
        xh_all = xw_all_mm[:, lo:hi]              # [N_pad, C]
        xh_t = xw_t_mm[:, lo:hi]                  # [T, C]

        # MX attention: dot-product logits gate GAT-style additive scores.
        logits = jax.lax.dot_general(xh_t, xh_all, contract_last,
                                     preferred_element_type=jnp.float32)      # [T, N_pad]
        gate = jax.nn.sigmoid(logits.astype(cdt)).astype(jnp.float32)
        score = (al_t[h:h + 1, :] + ar_t[:, h:h + 1]) * gate                   # [T, N_pad]
        score = jnp.where(score >= 0, score, negative_slope * score)           # leaky_relu
        score = jnp.where(mask, score, neg_big)                                # mask non-edges

        # softmax over source nodes j (per target row i); masked entries exp() to exactly 0
        m = jnp.max(score, axis=1, keepdims=True)
        e = jnp.exp((score - m).astype(cdt)).astype(jnp.float32)
        s = jnp.sum(e, axis=1, keepdims=True)
        alpha = e * pl.reciprocal(s, approx=True)

        oh = jnp.dot(alpha.astype(cdt), xh_all,
                     preferred_element_type=jnp.float32)                       # [T, C]
        if concat:
            acc_ref[:, lo:hi] = oh                # assemble heads in VMEM scratch
        else:
            acc = oh if acc is None else acc + oh

    if concat:
        res = acc_ref[...] + bias_ref[...]
        if apply_elu:
            res = jnp.where(res > 0, res, jnp.exp(res) - 1.0)
    else:
        res = acc * jnp.float32(1.0 / heads) + bias_ref[...]
        if apply_log_softmax:
            mx = jnp.max(res, axis=1, keepdims=True)
            lse = jnp.log(jnp.sum(jnp.exp(res - mx), axis=1, keepdims=True)) + mx
            res = res - lse
    out_ref[...] = res                            # single lane-dense store per tile


def supergat_layer(x, w, att_l, att_r, adj, bias, *, heads, out_ch, concat,
                   apply_elu=False, apply_log_softmax=False, row_tile=128,
                   lowp=False):
    n_pad, _ = x.shape
    hc = heads * out_ch
    assert n_pad % 128 == 0, "pad node count to a multiple of 128"
    assert row_tile % 32 == 0 and n_pad % row_tile == 0

    # block-diagonal attention projection matrices [H*C, H] (host-side, tiny)
    attl_bd = _block_diag(att_l)
    attr_bd = _block_diag(att_r)

    xw, al, ar = _project(x, w, attl_bd, attr_bd, row_tile=row_tile)
    al_t = al.T                                   # [H, N_pad] tiny XLA transpose outside kernel

    out_dim = hc if concat else out_ch
    kern = functools.partial(
        _attention_kernel, heads=heads, out_ch=out_ch, concat=concat,
        apply_elu=apply_elu, apply_log_softmax=apply_log_softmax,
        negative_slope=0.2, lowp=lowp)

    full = lambda i: (0, 0)
    row = lambda i: (i, 0)
    return pl.pallas_call(
        kern,
        out_shape=jax.ShapeDtypeStruct((n_pad, out_dim), jnp.float32),
        grid=(n_pad // row_tile,),
        in_specs=[pl.BlockSpec((n_pad, hc), full),        # xw, full-resident (all sources)
                  pl.BlockSpec((row_tile, hc), row),      # xw, target-row tile
                  pl.BlockSpec((heads, n_pad), full),     # att_l projection, transposed, full
                  pl.BlockSpec((row_tile, heads), row),   # att_r projection, target tile
                  pl.BlockSpec((row_tile, n_pad), row),   # int8 adjacency tile
                  pl.BlockSpec((1, out_dim), full)],      # bias
        out_specs=pl.BlockSpec((row_tile, out_dim), row),
        scratch_shapes=[pltpu.VMEM((row_tile, hc), jnp.float32)],
        compiler_params=pltpu.CompilerParams(
            dimension_semantics=("parallel",),
            vmem_limit_bytes=48 * 1024 * 1024),
    )(xw, xw, al_t, ar, adj, bias.reshape(1, -1))


def net_forward(x, adj, params, *, heads, hidden, num_classes, row_tile=64, lowp=False):
    # dropout(p=0.6, training=False) -> identity
    h = supergat_layer(x, params["w1"], params["attl1"], params["attr1"], adj,
                       params["b1"], heads=heads, out_ch=hidden, concat=True,
                       apply_elu=True, row_tile=row_tile, lowp=lowp)
    # dropout(p=0.6, training=False) -> identity
    out = supergat_layer(h, params["w2"], params["attl2"], params["attr2"], adj,
                         params["b2"], heads=heads, out_ch=num_classes,
                         concat=False, apply_log_softmax=True,
                         row_tile=row_tile, lowp=lowp)
    att_loss = jnp.float32(0.0)   # eval mode: SuperGATConv.get_attention_loss() == 0
    return out, att_loss


# ---------------- pure-JAX reference (for a correctness check) ----------------
def _reference_layer(x, w, att_l, att_r, adj, bias, heads, out_ch, concat,
                     apply_elu, apply_log_softmax):
    hi = jax.lax.Precision.HIGHEST
    xw = jnp.dot(x, w, precision=hi).reshape(-1, heads, out_ch)
    outs = []
    for h in range(heads):
        xh = xw[:, h, :]
        logits = jnp.dot(xh, xh.T, precision=hi)
        al = jnp.dot(xh, att_l[h], precision=hi)
        ar = jnp.dot(xh, att_r[h], precision=hi)
        score = (al[None, :] + ar[:, None]) * jax.nn.sigmoid(logits)
        score = jnp.where(score >= 0, score, 0.2 * score)
        score = jnp.where(adj > 0, score, -1e30)
        m = jnp.max(score, axis=1, keepdims=True)
        e = jnp.exp(score - m) * adj
        alpha = e / jnp.sum(e, axis=1, keepdims=True)
        outs.append(jnp.dot(alpha, xh, precision=hi))
    o = jnp.stack(outs, axis=1)
    if concat:
        o = o.reshape(o.shape[0], heads * out_ch) + bias
        if apply_elu:
            o = jnp.where(o > 0, o, jnp.exp(o) - 1.0)
    else:
        o = o.mean(axis=1) + bias
        if apply_log_softmax:
            o = jax.nn.log_softmax(o, axis=-1)
    return o


def build_adjacency(edge_index, num_nodes, num_nodes_padded):
    # int8 0/1 mask; adj[i, j] = 1 iff message flows source j -> target i; self loops on real nodes.
    src, dst = edge_index[0], edge_index[1]
    adj = jnp.zeros((num_nodes_padded, num_nodes_padded), jnp.int8)
    adj = adj.at[dst, src].set(1)
    idx = jnp.arange(num_nodes)
    adj = adj.at[idx, idx].set(1)                 # remove + re-add self loops (real nodes only)
    return adj


if __name__ == "__main__":
    N, F_IN, HEADS, HIDDEN, NUM_CLASSES = 16, 32, 8, 8, 4
    ROW_TILE = 64                                  # multiple of 32 (int8 sublane packing)
    N_PAD = _round_up(max(N, ROW_TILE), 128)       # source/lane dim padded to 128

    key = jax.random.PRNGKey(0)
    kx, k1, k2, k3, k4, k5, k6 = jax.random.split(key, 7)

    x = jax.random.normal(kx, (N, F_IN), jnp.float32)
    x_pad = jnp.zeros((N_PAD, F_IN), jnp.float32).at[:N].set(x)

    # deterministic undirected edge list: ring + skip-3 connections, both directions
    src, dst = [], []
    for i in range(N):
        for j in ((i + 1) % N, (i + 3) % N):
            src += [i, j]
            dst += [j, i]
    edge_index = jnp.array([src, dst], dtype=jnp.int32)        # [2, E]
    adj = build_adjacency(edge_index, N, N_PAD)                # int8 [N_PAD, N_PAD]

    params = {
        "w1":    0.2 * jax.random.normal(k1, (F_IN, HEADS * HIDDEN), jnp.float32),
        "attl1": 0.2 * jax.random.normal(k2, (HEADS, HIDDEN), jnp.float32),
        "attr1": 0.2 * jax.random.normal(k3, (HEADS, HIDDEN), jnp.float32),
        "b1":    jnp.zeros((HEADS * HIDDEN,), jnp.float32),
        "w2":    0.2 * jax.random.normal(k4, (HEADS * HIDDEN, HEADS * NUM_CLASSES), jnp.float32),
        "attl2": 0.2 * jax.random.normal(k5, (HEADS, NUM_CLASSES), jnp.float32),
        "attr2": 0.2 * jax.random.normal(k6, (HEADS, NUM_CLASSES), jnp.float32),
        "b2":    jnp.zeros((NUM_CLASSES,), jnp.float32),
    }

    # bf16 score/matmul operands only on chips with bf16 VPU/EUP (v6e, v7x); f32 on v5e and older.
    try:
        kind = jax.devices()[0].device_kind.lower()
    except Exception:
        kind = ""
    lowp = ("v6" in kind) or ("v7" in kind)

    log_probs_pad, att_loss = net_forward(x_pad, adj, params, heads=HEADS, hidden=HIDDEN,
                                          num_classes=NUM_CLASSES, row_tile=ROW_TILE,
                                          lowp=lowp)
    log_probs_pad = jax.block_until_ready(log_probs_pad)
    att_loss = jax.block_until_ready(att_loss)
    log_probs = log_probs_pad[:N]                  # drop padded target rows

    # reference check on the unpadded graph
    adj_f32 = adj[:N, :N].astype(jnp.float32)
    h_ref = _reference_layer(x, params["w1"], params["attl1"], params["attr1"], adj_f32,
                             params["b1"], HEADS, HIDDEN, True, True, False)
    ref = _reference_layer(h_ref, params["w2"], params["attl2"], params["attr2"], adj_f32,
                           params["b2"], HEADS, NUM_CLASSES, False, False, True)

    tol = 8e-2 if lowp else 2e-2
    err = float(jnp.max(jnp.abs(log_probs - ref)))
    assert log_probs.shape == (N, NUM_CLASSES)
    assert jnp.all(jnp.isfinite(log_probs))
    assert err < tol, err

    print("KERNEL_OK")
</pallas_src>

<mosaic_0001>
module attributes {stable_mosaic.version = 11 : i64} {
  func.func @_project_kernel(%arg0: i32, %arg1: memref<64x32xf32, #tpu.memory_space<vmem>>, %arg2: memref<32x64xf32, #tpu.memory_space<vmem>>, %arg3: memref<64x8xf32, #tpu.memory_space<vmem>>, %arg4: memref<64x8xf32, #tpu.memory_space<vmem>>, %arg5: memref<64x64xf32, #tpu.memory_space<vmem>>, %arg6: memref<64x8xf32, #tpu.memory_space<vmem>>, %arg7: memref<64x8xf32, #tpu.memory_space<vmem>>) attributes {dimension_semantics = [#tpu.dimension_semantics<parallel>], iteration_bounds = array<i64: 2>, scalar_prefetch = 0 : i64, scratch_operands = 0 : i64, tpu.core_type = #tpu.core_type<tc>, window_params = [{transform_indices = @transform_0, window_bounds = array<i64: 64, 32>}, {pipeline_mode = #tpu.pipeline_mode<synchronous>, transform_indices = @transform_1, window_bounds = array<i64: 32, 64>}, {pipeline_mode = #tpu.pipeline_mode<synchronous>, transform_indices = @transform_2, window_bounds = array<i64: 64, 8>}, {pipeline_mode = #tpu.pipeline_mode<synchronous>, transform_indices = @transform_3, window_bounds = array<i64: 64, 8>}, {transform_indices = @transform_4, window_bounds = array<i64: 64, 64>}, {transform_indices = @transform_5, window_bounds = array<i64: 64, 8>}, {transform_indices = @transform_6, window_bounds = array<i64: 64, 8>}]} {
    %c0 = arith.constant 0 : index
    %c0_0 = arith.constant 0 : index
    %0 = vector.load %arg1[%c0, %c0_0] : memref<64x32xf32, #tpu.memory_space<vmem>>, vector<64x32xf32>
    %c0_1 = arith.constant 0 : index
    %c0_2 = arith.constant 0 : index
    %1 = vector.load %arg2[%c0_1, %c0_2] : memref<32x64xf32, #tpu.memory_space<vmem>>, vector<32x64xf32>
    %cst = arith.constant dense<0.000000e+00> : vector<64x64xf32>
    %2 = tpu.matmul %0, %1, %cst {dimension_numbers = #tpu.dot_dimension_numbers<[1], [0], [0], [1], [0, 0, 1, 1], [], []>} : vector<64x32xf32>, vector<32x64xf32>, vector<64x64xf32> -> vector<64x64xf32>
    %c0_3 = arith.constant 0 : index
    %c0_4 = arith.constant 0 : index
    %3 = vector.load %arg5[%c0_3, %c0_4] : memref<64x64xf32, #tpu.memory_space<vmem>>, vector<64x64xf32>
    tpu.vector_store %arg5[%c0_3, %c0_4], %2 {strides = array<i32>} : memref<64x64xf32, #tpu.memory_space<vmem>>, vector<64x64xf32>,
    %c0_5 = arith.constant 0 : index
    %c0_6 = arith.constant 0 : index
    %4 = vector.load %arg3[%c0_5, %c0_6] : memref<64x8xf32, #tpu.memory_space<vmem>>, vector<64x8xf32>
    %cst_7 = arith.constant dense<0.000000e+00> : vector<64x8xf32>
    %5 = tpu.matmul %2, %4, %cst_7 {dimension_numbers = #tpu.dot_dimension_numbers<[1], [0], [0], [1], [0, 0, 1, 1], [], []>} : vector<64x64xf32>, vector<64x8xf32>, vector<64x8xf32> -> vector<64x8xf32>
    %c0_8 = arith.constant 0 : index
    %c0_9 = arith.constant 0 : index
    %6 = vector.load %arg6[%c0_8, %c0_9] : memref<64x8xf32, #tpu.memory_space<vmem>>, vector<64x8xf32>
    tpu.vector_store %arg6[%c0_8, %c0_9], %5 {strides = array<i32>} : memref<64x8xf32, #tpu.memory_space<vmem>>, vector<64x8xf32>,
    %c0_10 = arith.constant 0 : index
    %c0_11 = arith.constant 0 : index
    %7 = vector.load %arg4[%c0_10, %c0_11] : memref<64x8xf32, #tpu.memory_space<vmem>>, vector<64x8xf32>
    %cst_12 = arith.constant dense<0.000000e+00> : vector<64x8xf32>
    %8 = tpu.matmul %2, %7, %cst_12 {dimension_numbers = #tpu.dot_dimension_numbers<[1], [0], [0], [1], [0, 0, 1, 1], [], []>} : vector<64x64xf32>, vector<64x8xf32>, vector<64x8xf32> -> vector<64x8xf32>
    %c0_13 = arith.constant 0 : index
    %c0_14 = arith.constant 0 : index
    %9 = vector.load %arg7[%c0_13, %c0_14] : memref<64x8xf32, #tpu.memory_space<vmem>>, vector<64x8xf32>
    tpu.vector_store %arg7[%c0_13, %c0_14], %8 {strides = array<i32>} : memref<64x8xf32, #tpu.memory_space<vmem>>, vector<64x8xf32>,
    return
  }
  func.func @transform_0(%arg0: i32) -> (i32, i32) {
    %c0_i32 = arith.constant 0 : i32
    %c0_i32_0 = arith.constant 0 : i32
    return %arg0, %c0_i32 : i32, i32
  }
  func.func @transform_1(%arg0: i32) -> (i32, i32) {
    %c0_i32 = arith.constant 0 : i32
    %c0_i32_0 = arith.constant 0 : i32
    %c0_i32_1 = arith.constant 0 : i32
    return %c0_i32, %c0_i32_0 : i32, i32
  }
  func.func @transform_2(%arg0: i32) -> (i32, i32) {
    %c0_i32 = arith.constant 0 : i32
    %c0_i32_0 = arith.constant 0 : i32
    %c0_i32_1 = arith.constant 0 : i32
    return %c0_i32, %c0_i32_0 : i32, i32
  }
  func.func @transform_3(%arg0: i32) -> (i32, i32) {
    %c0_i32 = arith.constant 0 : i32
    %c0_i32_0 = arith.constant 0 : i32
    %c0_i32_1 = arith.constant 0 : i32
    return %c0_i32, %c0_i32_0 : i32, i32
  }
  func.func @transform_4(%arg0: i32) -> (i32, i32) {
    %c0_i32 = arith.constant 0 : i32
    %c0_i32_0 = arith.constant 0 : i32
    return %arg0, %c0_i32 : i32, i32
  }
  func.func @transform_5(%arg0: i32) -> (i32, i32) {
    %c0_i32 = arith.constant 0 : i32
    %c0_i32_0 = arith.constant 0 : i32
    return %arg0, %c0_i32 : i32, i32
  }
  func.func @transform_6(%arg0: i32) -> (i32, i32) {
    %c0_i32 = arith.constant 0 : i32
    %c0_i32_0 = arith.constant 0 : i32
    return %arg0, %c0_i32 : i32, i32
  }
}

</mosaic_0001>

<bundles_post_ra>
// kernel: tpu_custom_call.1
= control target key start
LH: loop header
LB: loop body
LE: loop exit
PB: predicated region body
PF: predicated region fallthrough
CT: control target
= control target key end

     0   :  { %s1082_s21 = smov 0   ;;  %s1249_s0 = inlined_call_operand.vmem [shape: f32[128,32], index: 0, kind: input, shape index: {}]   ;;  %s1250_s1 = inlined_call_operand.vmem [shape: f32[32,64], index: 1, kind: input, shape index: {}]   ;;  %s1251_s2 = inlined_call_operand.vmem [shape: f32[64,8], index: 2, kind: input, shape index: {}]   ;;  %s1252_s3 = inlined_call_operand.vmem [shape: f32[64,8], index: 3, kind: input, shape index: {}]   ;;  %s1253_s4 = inlined_call_operand.vmem [shape: f32[128,64], index: 4, kind: output, shape index: {0}]   ;;  %s1254_s5 = inlined_call_operand.vmem [shape: f32[128,8], index: 5, kind: output, shape index: {1}]   ;;  %s1255_s6 = inlined_call_operand.vmem [shape: f32[128,8], index: 6, kind: output, shape index: {2}]  }
   0x1 LB: > { %s824_s22 = sadd.s32 4294967295, %s1045_s21   ;;  %p828_p0 = scmp.ge.s32.totalorder %s1045_s21, 1  ;;  %s1045_s21 = sphi %s1082_s21, %s17_s21  }
   0x2   : > { %p218_p1 = scmp.lt.s32.totalorder %s1045_s21, 3 }
   0x4   : > { %p219_p2 = pnand %p828_p0, %p218_p1 }
   0x5   : > { %v290_v0 = vld [vmem:[%s1250_s1] sm:$0xff] (!%p219_p2)  ;;  %v291_v1 = vld [vmem:[%s1250_s1 + $0x8] sm:$0xff] (!%p219_p2)  ;;  %v292_v2 = vld [vmem:[%s1250_s1 + $0x10] sm:$0xff] (!%p219_p2)  ;;  %s829_s29 = sshll.u32 (!%p219_p2), %s824_s22, 3  ;;  %vm294_vm0 = vcmask (!%p219_p2), 261120   ;;  %vm424_vm1 = vcmask (!%p219_p2), 523264  }
   0x6   : > { %222 = sbr.rel (%p219_p2) target bundleno = 462 (0x1ce), region = 36  ;;  %v983_v3 = vpack.c.bf16 (!%p219_p2), %v291_v1, %v290_v0  ;;  %v293_v4 = vld [vmem:[%s1250_s1 + $0x18] sm:$0xff] (!%p219_p2)  ;;  %p259_p3 = scmp.lt.s32.totalorder (!%p219_p2), %s829_s29, 15  ;;  %v433_v5 = vld [vmem:[%s1251_s2] sm:$0xff] (!%p219_p2)  ;;  %v434_v6 = vld [vmem:[%s1251_s2 + $0x8] sm:$0xff] (!%p219_p2)  ;;  %vm570_vm2 = vcmask (!%p219_p2), 64512  }
   0x7   : > { %v987_v7 = vpack.c.bf16 (!%p219_p2), %v293_v4, %v292_v2  ;;  %v991_v8 = vpack.c.bf16 (!%p219_p2), %v434_v6, %v433_v5  ;;  %v579_v9 = vld [vmem:[%s1252_s3] sm:$0xff] (!%p219_p2)  ;;  %v580_v10 = vld [vmem:[%s1252_s3 + $0x8] sm:$0xff] (!%p219_p2)  ;;  %v435_v11 = vld [vmem:[%s1251_s2 + $0x10] sm:$0xff] (!%p219_p2) }
   0x8   : > { %984 = vmatprep.subr.bf16.mxu0 (!%p219_p2), %v983_v3  ;;  %v436_v12 = vld [vmem:[%s1251_s2 + $0x18] sm:$0xff] (!%p219_p2)  ;;  %v437_v14 = vld [vmem:[%s1251_s2 + $0x20] sm:$0xff] (!%p219_p2)  ;;  %v438_v15 = vld [vmem:[%s1251_s2 + $0x28] sm:$0xff] (!%p219_p2)  ;;  %v1007_v16 = vpack.c.bf16 (!%p219_p2), %v580_v10, %v579_v9 }
   0x9   : > { %986 = vmatpush3.bf16.msra.mxu0 (!%p219_p2), %v983_v3  ;;  %992 = vmatprep.subr.bf16.mxu1 (!%p219_p2), %v991_v8  ;;  %v995_v13 = vpack.c.bf16 (!%p219_p2), %v436_v12, %v435_v11  ;;  %v581_v17 = vld [vmem:[%s1252_s3 + $0x10] sm:$0xff] (!%p219_p2)  ;;  %v582_v18 = vld [vmem:[%s1252_s3 + $0x18] sm:$0xff] (!%p219_p2)  ;;  %v999_v19 = vpack.c.bf16 (!%p219_p2), %v438_v15, %v437_v14  ;;  %v583_v26 = vld [vmem:[%s1252_s3 + $0x20] sm:$0xff] (!%p219_p2) }
   0xa   : > { %988 = vmatprep.subr.bf16.mxu0 (!%p219_p2), %v987_v7  ;;  %994 = vmatpush3.bf16.msra.mxu1 (!%p219_p2), %v991_v8  ;;  %v439_v21 = vld [vmem:[%s1251_s2 + $0x30] sm:$0xff] (!%p219_p2)  ;;  %v440_v22 = vld [vmem:[%s1251_s2 + $0x38] sm:$0xff] (!%p219_p2)  ;;  %v1011_v25 = vpack.c.bf16 (!%p219_p2), %v582_v18, %v581_v17  ;;  %v584_v27 = vld [vmem:[%s1252_s3 + $0x28] sm:$0xff] (!%p219_p2) }
   0xb   : > { %996 = vmatprep.subr.bf16.mxu1 (!%p219_p2), %v995_v13  ;;  %v1003_v28 = vpack.c.bf16 (!%p219_p2), %v440_v22, %v439_v21  ;;  %v1015_v31 = vpack.c.bf16 (!%p219_p2), %v584_v27, %v583_v26  ;;  %v585_v32 = vld [vmem:[%s1252_s3 + $0x30] sm:$0xff] (!%p219_p2)  ;;  %v586_v33 = vld [vmem:[%s1252_s3 + $0x38] sm:$0xff] (!%p219_p2) }
   0xc   : > { %v1019_v36 = vpack.c.bf16 (!%p219_p2), %v586_v33, %v585_v32 }
   0xd   : > { %s1257_s29 = smov (!%p259_p3, %s829_s29), 15  ;;  %990 = vmatpush3.bf16.msra.mxu0 %v987_v7 }
   0xe   : > { %s1126_s25 = sshll.u32 %s1257_s29, 3  ;;  %1008 = vmatprep.subr.bf16.mxu0 %v1007_v16  ;;  %998 = vmatpush3.bf16.msra.mxu1 %v995_v13 }
   0xf   : > { %s1132_s28 = scalar_lea.vmem %s1249_s0, %s1126_s25  ;;  %1000 = vmatprep.subr.bf16.mxu1 %v999_v19  ;;  %s1178_s24 = scalar_lea.vmem %s1253_s4, %s1126_s25 }
  0x10   : > { %v282_v20 = vld [vmem:[%s1132_s28] sm:$0xff]  ;;  %v283_v23 = vld [vmem:[%s1132_s28 + $0x8] sm:$0xff]  ;;  %v284_v24 = vld [vmem:[%s1132_s28 + $0x10] sm:$0xff]  ;;  %s1220_s8 = scalar_lea.vmem %s1255_s6, %s1126_s25 }
  0x11   : > { %915 = vmatprep.mubr.msk.f32.mxu0 %vm294_vm0, %v282_v20  ;;  %v285_v29 = vld [vmem:[%s1132_s28 + $0x18] sm:$0xff]  ;;  %v286_v30 = vld [vmem:[%s1132_s28 + $0x20] sm:$0xff]  ;;  %v287_v34 = vld [vmem:[%s1132_s28 + $0x28] sm:$0xff] }
  0x12   : > { %916 = vmatmul.mubr.msk.f32.vlgmr.msra.gmra.mrb[0].mxu0 %vm294_vm0, %v283_v23  ;;  %1002 = vmatpush3.bf16.msra.mxu1 %v999_v19  ;;  %v288_v35 = vld [vmem:[%s1132_s28 + $0x30] sm:$0xff]  ;;  %v289_v37 = vld [vmem:[%s1132_s28 + $0x38] sm:$0xff]  ;;  %s274_s28 = scalar_lea.vmem %s1254_s5, %s1126_s25 }
  0x13   : > { %918 = vmatprep.mubr.msk.f32.mxu0 %vm294_vm0, %v284_v24  ;;  %1010 = vmatpush3.bf16.msra.mxu0 %v1007_v16 }
  0x14   : > { %1012 = vmatprep.subr.bf16.mxu0 %v1011_v25  ;;  %1004 = vmatprep.subr.bf16.mxu1 %v1003_v28 }
  0x16   : > { %919 = vmatmul.mubr.msk.f32.gmra.mrb[2].mxu0 %vm294_vm0, %v285_v29  ;;  %1006 = vmatpush3.bf16.msra.mxu1 %v1003_v28 }
  0x17   : > { %921 = vmatprep.mubr.msk.f32.mxu0 %vm294_vm0, %v286_v30  ;;  %1014 = vmatpush3.bf16.msra.mxu0 %v1011_v25 }
  0x18   : > { %1016 = vmatprep.subr.bf16.mxu0 %v1015_v31  ;;  %1023 = vmatprep.subr.bf16.mxu1 %v1007_v16 }
  0x1a   : > { %922 = vmatmul.mubr.msk.f32.gmra.mrb[4].mxu0 %vm294_vm0, %v287_v34 }
  0x1b   : > { %924 = vmatprep.mubr.msk.f32.mxu0 %vm294_vm0, %v288_v35  ;;  %1018 = vmatpush3.bf16.msra.mxu0 %v1015_v31 }
  0x1c   : > { %1020 = vmatprep.subr.bf16.mxu0 %v1019_v36 }
  0x1e   : > { %925 = vmatmul.mubr.msk.f32.gmra.mrb[6].mxu0 %vm294_vm0, %v289_v37 }
  0x1f   : > { %1022 = vmatpush3.bf16.msra.mxu0 %v1019_v36 }
  0xe5   : > { %v917_v38 = vpop.f32.mrb[0].mxu0 }
  0xe6   : > { %426 = vst.msk [vmem:[%s1178_s24 + $0x8] sm:$0xff] %vm424_vm1, %v917_v38  ;;  %v385_v39 = vpop.f32.mrb[1].mxu0 }
  0xe7   : > { %425 = vst.msk [vmem:[%s1178_s24] sm:$0xff] %vm424_vm1, %v385_v39  ;;  %943 = vmatprep.mubr.msk.f32.mxu1 %vm424_vm1, %v385_v39  ;;  %971 = vmatprep.mubr.msk.f32.mxu0 %vm424_vm1, %v385_v39 }
  0xe8   : > { %944 = vmatmul.mubr.msk.f32.vlgmr.msra.gmra.mrb[0].mxu1 %vm424_vm1, %v917_v38  ;;  %972 = vmatmul.mubr.msk.f32.vlgmr.msra.gmra.mrb[8].mxu0 %vm424_vm1, %v917_v38 }
  0xe9   : > { %1027 = vmatpush3.bf16.msra.mxu1 %v1007_v16  ;;  %v920_v40 = vpop.f32.mrb[2].mxu0 }
  0xea   : > { %428 = vst.msk [vmem:[%s1178_s24 + $0x18] sm:$0xff] %vm424_vm1, %v920_v40  ;;  %v395_v41 = vpop.f32.mrb[3].mxu0  ;;  %1024 = vmatprep.subr.bf16.mxu1 %v1011_v25 }
  0xeb   : > { %427 = vst.msk [vmem:[%s1178_s24 + $0x10] sm:$0xff] %vm424_vm1, %v395_v41  ;;  %946 = vmatprep.mubr.msk.f32.mxu1 %vm424_vm1, %v395_v41  ;;  %974 = vmatprep.mubr.msk.f32.mxu0 %vm424_vm1, %v395_v41 }
  0xec   : > { %947 = vmatmul.mubr.msk.f32.gmra.mrb[2].mxu1 %vm424_vm1, %v920_v40  ;;  %975 = vmatmul.mubr.msk.f32.gmra.mrb[10].mxu0 %vm424_vm1, %v920_v40 }
  0xed   : > { %1028 = vmatpush3.bf16.msra.mxu1 %v1011_v25  ;;  %v923_v42 = vpop.f32.mrb[4].mxu0 }
  0xee   : > { %430 = vst.msk [vmem:[%s1178_s24 + $0x28] sm:$0xff] %vm424_vm1, %v923_v42  ;;  %v405_v43 = vpop.f32.mrb[5].mxu0  ;;  %1025 = vmatprep.subr.bf16.mxu1 %v1015_v31 }
  0xef   : > { %429 = vst.msk [vmem:[%s1178_s24 + $0x20] sm:$0xff] %vm424_vm1, %v405_v43  ;;  %949 = vmatprep.mubr.msk.f32.mxu1 %vm424_vm1, %v405_v43  ;;  %977 = vmatprep.mubr.msk.f32.mxu0 %vm424_vm1, %v405_v43 }
  0xf0   : > { %950 = vmatmul.mubr.msk.f32.gmra.mrb[4].mxu1 %vm424_vm1, %v923_v42  ;;  %978 = vmatmul.mubr.msk.f32.gmra.mrb[12].mxu0 %vm424_vm1, %v923_v42 }
  0xf1   : > { %1029 = vmatpush3.bf16.msra.mxu1 %v1015_v31  ;;  %v926_v44 = vpop.f32.mrb[6].mxu0 }
  0xf2   : > { %432 = vst.msk [vmem:[%s1178_s24 + $0x38] sm:$0xff] %vm424_vm1, %v926_v44  ;;  %v415_v45 = vpop.f32.mrb[7].mxu0  ;;  %1026 = vmatprep.subr.bf16.mxu1 %v1019_v36 }
  0xf3   : > { %431 = vst.msk [vmem:[%s1178_s24 + $0x30] sm:$0xff] %vm424_vm1, %v415_v45  ;;  %952 = vmatprep.mubr.msk.f32.mxu1 %vm424_vm1, %v415_v45 }
  0xf4   : > { %953 = vmatmul.mubr.msk.f32.gmra.mrb[6].mxu1 %vm424_vm1, %v926_v44 }
  0xf5   : > { %1030 = vmatpush3.bf16.msra.mxu1 %v1019_v36  ;;  %980 = vmatprep.mubr.msk.f32.mxu1 %vm424_vm1, %v415_v45 }
  0xf8   : > { %981 = vmatmul.mubr.msk.f32.vlgmr.msra.gmra.mrb[8].mxu1 %vm424_vm1, %v926_v44 }
 0x1bb   : > { %v945_v46 = vpop.f32.mrb[0].mxu1  ;;  %v973_v47 = vpop.f32.mrb[8].mxu0 }
 0x1bc   : > { %572 = vst.msk [vmem:[%s274_s28 + $0x8] sm:$0xff] %vm570_vm2, %v945_v46  ;;  %693 = vst.msk [vmem:[%s1220_s8 + $0x8] sm:$0xff] %vm570_vm2, %v973_v47  ;;  %v531_v48 = vpop.f32.mrb[1].mxu1  ;;  %v653_v49 = vpop.f32.mrb[9].mxu0 }
 0x1bd   : > { %571 = vst.msk [vmem:[%s274_s28] sm:$0xff] %vm570_vm2, %v531_v48  ;;  %692 = vst.msk [vmem:[%s1220_s8] sm:$0xff] %vm570_vm2, %v653_v49 }
 0x1bf   : > { %v948_v50 = vpop.f32.mrb[2].mxu1  ;;  %v976_v51 = vpop.f32.mrb[10].mxu0 }
 0x1c0   : > { %574 = vst.msk [vmem:[%s274_s28 + $0x18] sm:$0xff] %vm570_vm2, %v948_v50  ;;  %695 = vst.msk [vmem:[%s1220_s8 + $0x18] sm:$0xff] %vm570_vm2, %v976_v51  ;;  %v541_v52 = vpop.f32.mrb[3].mxu1  ;;  %v663_v53 = vpop.f32.mrb[11].mxu0 }
 0x1c1   : > { %573 = vst.msk [vmem:[%s274_s28 + $0x10] sm:$0xff] %vm570_vm2, %v541_v52  ;;  %694 = vst.msk [vmem:[%s1220_s8 + $0x10] sm:$0xff] %vm570_vm2, %v663_v53 }
 0x1c3   : > { %v951_v54 = vpop.f32.mrb[4].mxu1  ;;  %v979_v55 = vpop.f32.mrb[12].mxu0 }
 0x1c4   : > { %576 = vst.msk [vmem:[%s274_s28 + $0x28] sm:$0xff] %vm570_vm2, %v951_v54  ;;  %697 = vst.msk [vmem:[%s1220_s8 + $0x28] sm:$0xff] %vm570_vm2, %v979_v55  ;;  %v551_v56 = vpop.f32.mrb[5].mxu1  ;;  %v673_v57 = vpop.f32.mrb[13].mxu0 }
 0x1c5   : > { %575 = vst.msk [vmem:[%s274_s28 + $0x20] sm:$0xff] %vm570_vm2, %v551_v56  ;;  %696 = vst.msk [vmem:[%s1220_s8 + $0x20] sm:$0xff] %vm570_vm2, %v673_v57 }
 0x1c7   : > { %v954_v58 = vpop.f32.mrb[6].mxu1 }
 0x1c8   : > { %578 = vst.msk [vmem:[%s274_s28 + $0x38] sm:$0xff] %vm570_vm2, %v954_v58  ;;  %v561_v59 = vpop.f32.mrb[7].mxu1 }
 0x1c9   : > { %577 = vst.msk [vmem:[%s274_s28 + $0x30] sm:$0xff] %vm570_vm2, %v561_v59 }
 0x1cb   : > { %v982_v60 = vpop.f32.mrb[8].mxu1 }
 0x1cc   : > { %699 = vst.msk [vmem:[%s1220_s8 + $0x38] sm:$0xff] %vm570_vm2, %v982_v60  ;;  %v683_v61 = vpop.f32.mrb[9].mxu1 }
 0x1cd   : > { %698 = vst.msk [vmem:[%s1220_s8 + $0x30] sm:$0xff] %vm570_vm2, %v683_v61 }
 0x1ce PF: > { %s17_s21 = sadd.s32 1, %s1045_s21  }
 0x1cf   : > { %p14_p4 = scmp.ge.s32.totalorder %s17_s21, 4  }
 0x1d1   :  { %16 = sbr.rel (!%p14_p4) target bundleno = 1 (0x1), region = 90 }

</bundles_post_ra>
